<compile_context>
chip_gen: v7x
topology: tpu7x:2x2x1
jax: 0.10.0
libtpu: 0.0.40
codegen_flags: <defaults>
</compile_context>

<pallas_src>
import jax
import jax.numpy as jnp
from jax.experimental import pallas as pl
from jax.experimental.pallas import tpu as pltpu


def _mlp_kernel(x_ref, w1_ref, b1_ref, w2_ref, b2_ref, out_ref):
    """Fused 2-layer MLP tile: out = relu(x @ w1 + b1) @ w2 + b2.

    No dtype upcasts on the MXU operands: f32 accumulation comes from
    preferred_element_type, so bf16 params keep full MXU throughput.
    """
    x = x_ref[...]
    h = jnp.dot(x, w1_ref[...], preferred_element_type=jnp.float32)
    h = jnp.maximum(h + b1_ref[...].astype(jnp.float32), 0.0)   # bias + ReLU (VPU)
    h = h.astype(w2_ref.dtype)                                  # back to param dtype for MXU
    y = jnp.dot(h, w2_ref[...], preferred_element_type=jnp.float32)
    y = y + b2_ref[...].astype(jnp.float32)
    out_ref[...] = y.astype(out_ref.dtype)


def _round_up(x, m):
    return ((x + m - 1) // m) * m


def neuracore_forward(joint_state, w1, b1, w2, b2, *,
                      output_prediction_horizon, action_dim,
                      batch_tile=4096, compute_dtype=None):
    """Concrete NeuracoreModel.forward: predict actions over a horizon.

    joint_state: (B, D_state)
    returns:     (B, output_prediction_horizon, action_dim)

    Tiling: weights/biases stay VMEM-resident (constant index_map); x / out
    stream with the batch grid and double-buffer against compute. The batch
    axis is "parallel" so v7x can shard grid steps across its two TensorCores.
    The last block may be ragged (no explicit padding); OOB rows are garbage
    on read and masked on write — safe because rows are independent.

    compute_dtype: optionally cast activations/params (e.g. jnp.bfloat16) to
    halve HBM streaming traffic; accumulation stays f32 inside the kernel.
    """
    B, d_state = joint_state.shape
    hidden = w1.shape[1]
    d_out = w2.shape[1]
    assert d_out == output_prediction_horizon * action_dim

    if compute_dtype is not None:
        joint_state = joint_state.astype(compute_dtype)
        w1 = w1.astype(compute_dtype)
        b1 = b1.astype(compute_dtype)
        w2 = w2.astype(compute_dtype)
        b2 = b2.astype(compute_dtype)
    out_dtype = joint_state.dtype

    # Tile selection:
    #  * tiny B -> single full-extent block (legal: block dim == array dim).
    #  * otherwise multiple of 8 sublanes, capped at ceil(B/2) so the parallel
    #    batch axis has >= 2 grid steps for v7x megacore sharding.
    if B <= 8:
        tm = B
    else:
        tm = min(batch_tile, _round_up(pl.cdiv(B, 2), 8))
        tm = max(tm, 8)
    grid = (pl.cdiv(B, tm),)

    # Explicit VMEM budget (double-buffered streams + resident params),
    # capped against v7x's 64 MiB physical VMEM.
    itemsize = jnp.dtype(out_dtype).itemsize
    stream_bytes = 2 * tm * (d_state + d_out) * itemsize
    param_bytes = 2 * (d_state * hidden + hidden + hidden * d_out + d_out) * itemsize
    vmem_limit = int(1.5 * (stream_bytes + param_bytes)) + (4 << 20)
    vmem_limit = min(max(vmem_limit, 16 << 20), 48 << 20)

    # TODO(synk): at production scale (hidden/d_out in the thousands) add a K
    # grid axis ("arbitrary", last) with an f32 accumulator scratch, keep dims
    # multiples of 128/256, and consider pipeline_mode=pl.Buffered(3) on the
    # streaming x/out specs if the DMAs become exposed.
    out2d = pl.pallas_call(
        _mlp_kernel,
        out_shape=jax.ShapeDtypeStruct((B, d_out), out_dtype),
        grid_spec=pl.GridSpec(
            grid=grid,
            in_specs=[
                pl.BlockSpec((tm, d_state), lambda i: (i, 0)),        # streams with grid
                pl.BlockSpec((d_state, hidden), lambda i: (0, 0)),    # VMEM-resident
                pl.BlockSpec((1, hidden), lambda i: (0, 0)),          # VMEM-resident
                pl.BlockSpec((hidden, d_out), lambda i: (0, 0)),      # VMEM-resident
                pl.BlockSpec((1, d_out), lambda i: (0, 0)),           # VMEM-resident
            ],
            out_specs=pl.BlockSpec((tm, d_out), lambda i: (i, 0)),    # streams with grid
        ),
        compiler_params=pltpu.CompilerParams(
            dimension_semantics=("parallel",),   # v7x megacore; no-op on v5e/v6e
            vmem_limit_bytes=vmem_limit,
        ),
    )(joint_state, w1, b1, w2, b2)

    # Free contiguous reshape; the kernel output itself stays lane-dense (d_out = 128 here).
    return out2d.reshape(B, output_prediction_horizon, action_dim)


def _reference_forward(joint_state, w1, b1, w2, b2, horizon, action_dim,
                       compute_dtype=None):
    """Kernel-faithful reference (same dtype-cast points as the Pallas body)."""
    if compute_dtype is not None:
        joint_state = joint_state.astype(compute_dtype)
        w1 = w1.astype(compute_dtype)
        b1 = b1.astype(compute_dtype)
        w2 = w2.astype(compute_dtype)
        b2 = b2.astype(compute_dtype)
    h = jnp.dot(joint_state, w1, preferred_element_type=jnp.float32)
    h = jnp.maximum(h + b1.astype(jnp.float32), 0.0).astype(w2.dtype)
    y = jnp.dot(h, w2, preferred_element_type=jnp.float32) + b2.astype(jnp.float32)
    return y.astype(joint_state.dtype).reshape(joint_state.shape[0], horizon, action_dim)


if __name__ == "__main__":
    # Small shapes consistent with the module's intent:
    #   batch=2, state_dim=32, hidden=32, output_prediction_horizon=8, action_dim=16
    B = 2
    D_STATE = 32
    HIDDEN = 32
    HORIZON = 8          # model_init_description.output_prediction_horizon
    ACTION_DIM = 16
    D_OUT = HORIZON * ACTION_DIM   # 128 -> lane-dense kernel output

    key = jax.random.PRNGKey(0)
    k_x, k_w1, k_b1, k_w2, k_b2 = jax.random.split(key, 5)

    # Deterministic synthetic parameters (no checkpoint loading).
    joint_state = jax.random.normal(k_x, (B, D_STATE), dtype=jnp.float32)
    w1 = jax.random.normal(k_w1, (D_STATE, HIDDEN), dtype=jnp.float32) * 0.1
    b1 = jax.random.normal(k_b1, (1, HIDDEN), dtype=jnp.float32) * 0.01
    w2 = jax.random.normal(k_w2, (HIDDEN, D_OUT), dtype=jnp.float32) * 0.1
    b2 = jax.random.normal(k_b2, (1, D_OUT), dtype=jnp.float32) * 0.01

    # --- 1) Small-batch f32 path (single full-extent block) ---
    out = neuracore_forward(
        joint_state, w1, b1, w2, b2,
        output_prediction_horizon=HORIZON, action_dim=ACTION_DIM,
    )
    out = jax.block_until_ready(out)
    ref = _reference_forward(joint_state, w1, b1, w2, b2, HORIZON, ACTION_DIM)
    assert out.shape == (B, HORIZON, ACTION_DIM)
    assert jnp.allclose(out, ref, atol=1e-5, rtol=1e-5)

    # --- 2) Batched f32 path: >=2 grid steps + ragged final block (no pad/slice) ---
    B_BIG = 1043   # odd, not a multiple of the tile -> exercises masked edge block
    x_big = jax.random.normal(jax.random.PRNGKey(1), (B_BIG, D_STATE), dtype=jnp.float32)
    out_big = neuracore_forward(
        x_big, w1, b1, w2, b2,
        output_prediction_horizon=HORIZON, action_dim=ACTION_DIM,
    )
    out_big = jax.block_until_ready(out_big)
    ref_big = _reference_forward(x_big, w1, b1, w2, b2, HORIZON, ACTION_DIM)
    assert out_big.shape == (B_BIG, HORIZON, ACTION_DIM)
    assert jnp.allclose(out_big, ref_big, atol=1e-3, rtol=1e-3)

    # --- 3) Batched bf16 streaming path (halved HBM traffic, native MXU dtype) ---
    out_bf16 = neuracore_forward(
        x_big, w1, b1, w2, b2,
        output_prediction_horizon=HORIZON, action_dim=ACTION_DIM,
        compute_dtype=jnp.bfloat16,
    )
    out_bf16 = jax.block_until_ready(out_bf16)
    ref_bf16 = _reference_forward(x_big, w1, b1, w2, b2, HORIZON, ACTION_DIM,
                                  compute_dtype=jnp.bfloat16)
    assert out_bf16.dtype == jnp.bfloat16
    assert jnp.allclose(out_bf16.astype(jnp.float32), ref_bf16.astype(jnp.float32),
                        atol=5e-2, rtol=5e-2)

    # TODO(synk): training_step / configure_optimizers / tokenize_text are
    # abstract (or NotImplementedError) in the base class and have no compute
    # to translate; _validate_input_output_types is pure Python set logic.
    print("KERNEL_OK")
</pallas_src>

<mosaic_0001>
module attributes {stable_mosaic.version = 11 : i64} {
  func.func @_mlp_kernel(%arg0: i32, %arg1: memref<2x32xf32, #tpu.memory_space<vmem>>, %arg2: memref<32x32xf32, #tpu.memory_space<vmem>>, %arg3: memref<1x32xf32, #tpu.memory_space<vmem>>, %arg4: memref<32x128xf32, #tpu.memory_space<vmem>>, %arg5: memref<1x128xf32, #tpu.memory_space<vmem>>, %arg6: memref<2x128xf32, #tpu.memory_space<vmem>>) attributes {dimension_semantics = [#tpu.dimension_semantics<parallel>], iteration_bounds = array<i64: 1>, scalar_prefetch = 0 : i64, scratch_operands = 0 : i64, tpu.core_type = #tpu.core_type<tc>, window_params = [{transform_indices = @transform_0, window_bounds = array<i64: 2, 32>}, {pipeline_mode = #tpu.pipeline_mode<synchronous>, transform_indices = @transform_1, window_bounds = array<i64: 32, 32>}, {pipeline_mode = #tpu.pipeline_mode<synchronous>, transform_indices = @transform_2, window_bounds = array<i64: 1, 32>}, {pipeline_mode = #tpu.pipeline_mode<synchronous>, transform_indices = @transform_3, window_bounds = array<i64: 32, 128>}, {pipeline_mode = #tpu.pipeline_mode<synchronous>, transform_indices = @transform_4, window_bounds = array<i64: 1, 128>}, {transform_indices = @transform_5, window_bounds = array<i64: 2, 128>}]} {
    %c0 = arith.constant 0 : index
    %c0_0 = arith.constant 0 : index
    %0 = vector.load %arg1[%c0, %c0_0] : memref<2x32xf32, #tpu.memory_space<vmem>>, vector<2x32xf32>
    %c0_1 = arith.constant 0 : index
    %c0_2 = arith.constant 0 : index
    %1 = vector.load %arg2[%c0_1, %c0_2] : memref<32x32xf32, #tpu.memory_space<vmem>>, vector<32x32xf32>
    %cst = arith.constant dense<0.000000e+00> : vector<2x32xf32>
    %2 = tpu.matmul %0, %1, %cst {dimension_numbers = #tpu.dot_dimension_numbers<[1], [0], [0], [1], [0, 0, 1, 1], [], []>} : vector<2x32xf32>, vector<32x32xf32>, vector<2x32xf32> -> vector<2x32xf32>
    %c0_3 = arith.constant 0 : index
    %c0_4 = arith.constant 0 : index
    %3 = vector.load %arg3[%c0_3, %c0_4] : memref<1x32xf32, #tpu.memory_space<vmem>>, vector<1x32xf32>
    %4 = vector.broadcast %3 : vector<1x32xf32> to vector<2x32xf32>
    %5 = arith.addf %2, %4 : vector<2x32xf32>
    %cst_5 = arith.constant 0.000000e+00 : f32
    %6 = vector.broadcast %cst_5 : f32 to vector<2x32xf32>
    %7 = arith.maximumf %5, %6 : vector<2x32xf32>
    %c0_6 = arith.constant 0 : index
    %c0_7 = arith.constant 0 : index
    %8 = vector.load %arg4[%c0_6, %c0_7] : memref<32x128xf32, #tpu.memory_space<vmem>>, vector<32x128xf32>
    %cst_8 = arith.constant dense<0.000000e+00> : vector<2x128xf32>
    %9 = tpu.matmul %7, %8, %cst_8 {dimension_numbers = #tpu.dot_dimension_numbers<[1], [0], [0], [1], [0, 0, 1, 1], [], []>} : vector<2x32xf32>, vector<32x128xf32>, vector<2x128xf32> -> vector<2x128xf32>
    %c0_9 = arith.constant 0 : index
    %c0_10 = arith.constant 0 : index
    %10 = vector.load %arg5[%c0_9, %c0_10] : memref<1x128xf32, #tpu.memory_space<vmem>>, vector<1x128xf32>
    %11 = vector.broadcast %10 : vector<1x128xf32> to vector<2x128xf32>
    %12 = arith.addf %9, %11 : vector<2x128xf32>
    %c0_11 = arith.constant 0 : index
    %c0_12 = arith.constant 0 : index
    %13 = vector.load %arg6[%c0_11, %c0_12] : memref<2x128xf32, #tpu.memory_space<vmem>>, vector<2x128xf32>
    tpu.vector_store %arg6[%c0_11, %c0_12], %12 {strides = array<i32>} : memref<2x128xf32, #tpu.memory_space<vmem>>, vector<2x128xf32>,
    return
  }
  func.func @transform_0(%arg0: i32) -> (i32, i32) {
    %c0_i32 = arith.constant 0 : i32
    %c0_i32_0 = arith.constant 0 : i32
    return %arg0, %c0_i32 : i32, i32
  }
  func.func @transform_1(%arg0: i32) -> (i32, i32) {
    %c0_i32 = arith.constant 0 : i32
    %c0_i32_0 = arith.constant 0 : i32
    %c0_i32_1 = arith.constant 0 : i32
    return %c0_i32, %c0_i32_0 : i32, i32
  }
  func.func @transform_2(%arg0: i32) -> (i32, i32) {
    %c0_i32 = arith.constant 0 : i32
    %c0_i32_0 = arith.constant 0 : i32
    %c0_i32_1 = arith.constant 0 : i32
    return %c0_i32, %c0_i32_0 : i32, i32
  }
  func.func @transform_3(%arg0: i32) -> (i32, i32) {
    %c0_i32 = arith.constant 0 : i32
    %c0_i32_0 = arith.constant 0 : i32
    %c0_i32_1 = arith.constant 0 : i32
    return %c0_i32, %c0_i32_0 : i32, i32
  }
  func.func @transform_4(%arg0: i32) -> (i32, i32) {
    %c0_i32 = arith.constant 0 : i32
    %c0_i32_0 = arith.constant 0 : i32
    %c0_i32_1 = arith.constant 0 : i32
    return %c0_i32, %c0_i32_0 : i32, i32
  }
  func.func @transform_5(%arg0: i32) -> (i32, i32) {
    %c0_i32 = arith.constant 0 : i32
    %c0_i32_0 = arith.constant 0 : i32
    return %arg0, %c0_i32 : i32, i32
  }
}

</mosaic_0001>

<bundles_post_ra>
// kernel: tpu_custom_call.1
= control target key start
LH: loop header
LB: loop body
LE: loop exit
PB: predicated region body
PF: predicated region fallthrough
CT: control target
= control target key end

     0   :  { %10 = vsyncpa [#allocation3], 0  ;;  %s498_s0 = inlined_call_operand.hbm [shape: f32[2,32], index: 0, kind: input, shape index: {}]   ;;  %s499_s1 = inlined_call_operand.hbm [shape: f32[32,32], index: 1, kind: input, shape index: {}]   ;;  %s500_s2 = inlined_call_operand.vmem [shape: f32[1,32], index: 2, kind: input, shape index: {}]   ;;  %s501_s3 = inlined_call_operand.hbm [shape: f32[32,128], index: 3, kind: input, shape index: {}]   ;;  %s502_s4 = inlined_call_operand.vmem [shape: f32[1,128], index: 4, kind: input, shape index: {}]   ;;  %s503_s5 = inlined_call_operand.hbm [shape: f32[2,128], index: 5, kind: output, shape index: {}]  }
   0x1   :  { %11 = vsyncpa [#allocation6], 0 }
   0x2   :  { %12 = vsyncpa [#allocation4], 0  ;;  %s399_s18 = smov [#allocation5]   ;;  %s305_s22 = scalar_lea.hbm %s499_s1, 512 }
   0x3   :  { %s28_s19 = sshll.u32 %s399_s18, 4  ;;  %p306_p0 = scmp.ne.s32.totalorder %s499_s1, %s305_s22  ;;  %s29_s19 = int_to_ptr.vmem [resolvable:$true] %s28_s19 }
   0x4   :  { %p309_p1 = scmp.lt.u32.totalorder %s305_s22, %s499_s1 }
   0x6   :  { %p311_p2 = pnand %p309_p1, %p306_p0 }
   0x8   :  { %314 = shalt.err (!%p311_p2)
}
   0x9   :  { %s315_s27 = scalar_lea.vmem %s29_s19, 512  ;;  %p320_p4 = scmp.lt.s32.totalorder %s29_s19, %s29_s19 }
   0xa   :  { %p316_p3 = scmp.ne.s32.totalorder %s29_s19, %s315_s27  ;;  %p321_p5 = scmp.lt.s32.totalorder %s315_s27, %s315_s27 }
   0xc   :  { %p322_p6 = por %p321_p5, %p320_p4 }
   0xe   :  { %p323_p7 = pnand %p322_p6, %p316_p3 }
  0x10   :  { %326 = shalt.err (!%p323_p7)
}
  0x11   :  { %s400_s28 = smov 128   ;;  %s401_s29 = smov 8  }
  0x12   :  { %34 = dma.hbm_to_vmem [thread:$0]  %s499_s1, 512, %s29_s19, [#allocation6], %s400_s28, %s400_s28, %s401_s29  }
  0x13   :  { %s402_s7 = smov [#allocation2]   ;;  %s403_s9 = smov [#allocation7]  }
  0x14   :  { %s19_s8 = sshll.u32 %s402_s7, 4  ;;  %s42_s10 = sshll.u32 %s403_s9, 4  ;;  %s20_s8 = int_to_ptr.vmem [resolvable:$true] %s19_s8  ;;  %s43_s10 = int_to_ptr.vmem [resolvable:$true] %s42_s10 }
  0x15   :  { %s327_s13 = scalar_lea.hbm %s498_s0, 32 }
  0x16   :  { %p328_p8 = scmp.ne.s32.totalorder %s498_s0, %s327_s13  ;;  %p331_p9 = scmp.lt.u32.totalorder %s327_s13, %s498_s0 }
  0x18   :  { %p333_p10 = pnand %p331_p9, %p328_p8 }
  0x1a   :  { %336 = shalt.err (!%p333_p10)
}
  0x1b   :  { %s337_s1 = scalar_lea.vmem %s20_s8, 32  ;;  %p342_p12 = scmp.lt.s32.totalorder %s20_s8, %s20_s8 }
  0x1c   :  { %p338_p11 = scmp.ne.s32.totalorder %s20_s8, %s337_s1  ;;  %p343_p13 = scmp.lt.s32.totalorder %s337_s1, %s337_s1 }
  0x1e   :  { %p344_p0 = por %p343_p13, %p342_p12 }
  0x20   :  { %p345_p1 = pnand %p344_p0, %p338_p11 }
  0x22   :  { %348 = shalt.err (!%p345_p1)
}
  0x23   :  { %22 = dma.hbm_to_vmem [thread:$0]  %s498_s0, 32, %s20_s8, [#allocation3]  }
  0x24   :  { %s349_s22 = scalar_lea.hbm %s501_s3, 512 }
  0x25   :  { %p350_p2 = scmp.ne.s32.totalorder %s501_s3, %s349_s22  ;;  %p353_p3 = scmp.lt.u32.totalorder %s349_s22, %s501_s3 }
  0x27   :  { %p355_p4 = pnand %p353_p3, %p350_p2 }
  0x29   :  { %358 = shalt.err (!%p355_p4)
}
  0x2a   :  { %s359_s27 = scalar_lea.vmem %s43_s10, 512  ;;  %p364_p6 = scmp.lt.s32.totalorder %s43_s10, %s43_s10 }
  0x2b   :  { %p360_p5 = scmp.ne.s32.totalorder %s43_s10, %s359_s27  ;;  %p365_p7 = scmp.lt.s32.totalorder %s359_s27, %s359_s27 }
  0x2d   :  { %p366_p8 = por %p365_p7, %p364_p6 }
  0x2f   :  { %p367_p9 = pnand %p366_p8, %p360_p5 }
  0x31   :  { %370 = shalt.err (!%p367_p9)
}
  0x32   :  { %48 = dma.hbm_to_vmem [thread:$0]  %s501_s3, 512, %s43_s10, [#allocation6], %s400_s28, %s400_s28, %s401_s29  }
  0x33   :  { %393 = dma.done.wait [#allocation3], 32  }
  0x34   :  { %394 = vsyncadd [#allocation3], 4294967264 }
  0x35   :  { %395 = dma.done.wait [#allocation6], 1024  }
  0x36   :  { %396 = vsyncadd [#allocation6], 4294966272  ;;  %v404_v0 = vmov 0.0|0.0   ;;  %vm405_vm0 = vmmov 0   ;;  %v406_v1 = vmov 0.0   ;;  %v61_v2 = vld [vmem:[#allocation5] sm:$0xff] }
  0x37   :  { %284 = vmatprep.subr.bf16.mxu0 %v404_v0  ;;  %270 = vmatprep.mubr.msk.f32.mxu0 %vm405_vm0, %v406_v1  ;;  %v62_v3 = vld [vmem:[#allocation5 + $0x8] sm:$0xff]  ;;  %v63_v4 = vld [vmem:[#allocation5 + $0x10] sm:$0xff]  ;;  %v64_v6 = vld [vmem:[#allocation5 + $0x18] sm:$0xff]  ;;  %vm72_vm1 = vcmask 261120   ;;  %s407_s7 = smov [#allocation8]  }
  0x38   :  { %290 = vmatprep.subr.bf16.mxu1 %v404_v0  ;;  %281 = vmatprep.mubr.msk.f32.mxu1 %vm405_vm0, %v406_v1  ;;  %v285_v5 = vpack.c.bf16 %v62_v3, %v61_v2  ;;  %v147_v7 = vld [vmem:[#allocation7] sm:$0xff]  ;;  %v148_v8 = vld [vmem:[#allocation7 + $0x8] sm:$0xff]  ;;  %v288_v9 = vpack.c.bf16 %v64_v6, %v63_v4  ;;  %v60_v11 = vld [vmem:[#allocation2] sm:$0x3]  ;;  %s238_s8 = sshll.u32 %s407_s7, 4  ;;  %s239_s8 = int_to_ptr.vmem [resolvable:$true] %s238_s8 }
  0x39   :  { %v291_v10 = vpack.c.bf16 %v148_v8, %v147_v7  ;;  %v149_v12 = vld [vmem:[#allocation7 + $0x10] sm:$0xff]  ;;  %v150_v13 = vld [vmem:[#allocation7 + $0x18] sm:$0xff]  ;;  %s371_s9 = scalar_lea.vmem %s239_s8, 32  ;;  %p376_p11 = scmp.lt.s32.totalorder %s239_s8, %s239_s8 }
  0x3a   :  { %286 = vmatpush3.bf16.msra.mxu0 %v285_v5  ;;  %v294_v14 = vpack.c.bf16 %v150_v13, %v149_v12  ;;  %v248_v15 = vld [vmem:[%s500_s2] ss:$0 sm:$0xff]  ;;  %p372_p10 = scmp.ne.s32.totalorder %s239_s8, %s371_s9  ;;  %p377_p12 = scmp.lt.s32.totalorder %s371_s9, %s371_s9 }
  0x3b   :  { %287 = vmatprep.subr.bf16.mxu0 %v404_v0  ;;  %292 = vmatpush3.bf16.msra.mxu1 %v291_v10  ;;  %v250_v20 = vld [vmem:[%s502_s4] ss:$0 sm:$0xff] }
  0x3c   :  { %293 = vmatprep.subr.bf16.mxu1 %v404_v0  ;;  %p378_p13 = por %p377_p12, %p376_p11 }
  0x3e   :  { %289 = vmatpush3.bf16.msra.mxu0 %v288_v9  ;;  %p379_p0 = pnand %p378_p13, %p372_p10 }
  0x3f   :  { %295 = vmatpush3.bf16.msra.mxu1 %v294_v14 }
  0x41   :  { %271 = vmatmul.mubr.msk.f32.vlgmr.msra.gmra.mrb[0].mxu0 %vm72_vm1, %v60_v11 }
 0x114   :  { %v142_v16 = vpop.f32.mrb[0].mxu0 }
 0x115   :  { %v143_v17 = vadd.f32 %v248_v15, %v142_v16  ;;  %v272_v18 = vpop.f32.mrb[1].mxu0 }
 0x117   :  { %v146_v19 = vmax.f32 %v143_v17, 0.0 }
 0x119   :  { %282 = vmatmul.mubr.msk.f32.vlgmr.msra.gmra.mrb[0].mxu1 %vm72_vm1, %v146_v19 }
 0x1ec   :  { %v227_v21 = vpop.f32.mrb[0].mxu1 }
 0x1ed   :  { %v228_v22 = vadd.f32 %v250_v20, %v227_v21  ;;  %v283_v23 = vpop.f32.mrb[1].mxu1 }
 0x1ef   :  { %231 = vst [vmem:[#allocation8] sm:$0x3] %v228_v22 }
 0x1f0   :  { %382 = shalt.err (!%p379_p0)
}
 0x1f1   :  { %s383_s11 = scalar_lea.hbm %s503_s5, 32 }
 0x1f2   :  { %p384_p1 = scmp.ne.s32.totalorder %s503_s5, %s383_s11  ;;  %p387_p2 = scmp.lt.u32.totalorder %s383_s11, %s503_s5 }
 0x1f4   :  { %p389_p3 = pnand %p387_p2, %p384_p1 }
 0x1f6   :  { %392 = shalt.err (!%p389_p3)
}
 0x1f7   :  { %241 = dma.vmem_to_hbm [thread:$0]  %s239_s8, 32, %s503_s5, [#allocation4]  }
 0x1f8   :  { %397 = dma.done.wait [#allocation4], 32  }
 0x1f9   :  { %398 = vsyncadd [#allocation4], 4294967264 }
 0x1fa   :  { %245 = vsyncpa [#allocation3], 1 }
 0x1fb   :  { %246 = vsyncpa [#allocation6], 1 }
 0x1fc   :  { %247 = vsyncpa [#allocation4], 1 }

</bundles_post_ra>
